<compile_context>
chip_gen: v7x
topology: tpu7x:2x2x1
jax: 0.10.0
libtpu: 0.0.40
codegen_flags: <defaults>
</compile_context>

<pallas_src>
import functools

import jax
import jax.numpy as jnp
import numpy as np
from jax.experimental import pallas as pl
from jax.experimental.pallas import tpu as pltpu

LANE = 128
SUBLANE = 8


def _round_up(x, m):
    return (x + m - 1) // m * m


# ----------------------------- Pallas kernel --------------------------------
def _gemm_bias_relu_kernel(x_ref, w_ref, b_ref, o_ref):
    # x_ref: (Mb, K)          patch rows for this block
    # w_ref: (K, C_out_p)     full (folded-tap) weight, lane-padded
    # b_ref: (1, C_out_p)     bias row (f32)
    # o_ref: (Mb, C_out_p)    lane-dense output block
    #
    # Local accumulator (stays in vregs / MXU result buffer); o_ref is written
    # exactly once, with bias + ReLU fused into the store.
    acc = jnp.dot(x_ref[...], w_ref[...], preferred_element_type=jnp.float32)
    acc = acc + b_ref[...]
    o_ref[...] = jnp.maximum(acc, 0.0).astype(o_ref.dtype)


# --------------------------- conv2DRelu forward ------------------------------
def conv2d_relu(x_nchw, weight, bias, *, stride=1, padding=0, dilation=1,
                compute_dtype=jnp.float32, block_m=256):
    """Equivalent of nn.Conv2d(..., bias=True) followed by ReLU.

    x_nchw : [N, C_in, H, W]         (PyTorch layout)
    weight : [C_out, C_in, KH, KW]   (PyTorch layout)
    bias   : [C_out]
    """
    N, C_in, H, W = x_nchw.shape
    C_out, _, KH, KW = weight.shape

    H_out = (H + 2 * padding - dilation * (KH - 1) - 1) // stride + 1
    W_out = (W + 2 * padding - dilation * (KW - 1) - 1) // stride + 1

    K = KH * KW * C_in                           # folded contraction depth
    C_out_p = _round_up(max(C_out, LANE), LANE)  # lane-dense output width
    M = N * H_out * W_out
    Mb = min(block_m, _round_up(M, SUBLANE))     # rows per grid step
    M_pad = _round_up(M, Mb)

    # ---- wrapper glue (layout plumbing, pure XLA, outside the kernel) ----
    # NCHW -> NHWC, spatial zero-pad, extract (kh, kw) taps with stride /
    # dilation compacted by strided slices, concatenate along channels.
    x = jnp.transpose(x_nchw, (0, 2, 3, 1))
    x = jnp.pad(x, ((0, 0), (padding, padding), (padding, padding), (0, 0)))
    taps = []
    for kh in range(KH):
        for kw in range(KW):
            h0 = kh * dilation
            w0 = kw * dilation
            taps.append(x[:, h0:h0 + (H_out - 1) * stride + 1:stride,
                             w0:w0 + (W_out - 1) * stride + 1:stride, :])
    patches = jnp.concatenate(taps, axis=-1)                 # [N,Ho,Wo,K]
    patches = patches.reshape(M, K).astype(compute_dtype)
    patches = jnp.pad(patches, ((0, M_pad - M), (0, 0)))     # sublane-aligned M

    # weight (C_out, C_in, KH, KW) -> (KH, KW, C_in, C_out) -> (K, C_out_p).
    w = jnp.transpose(weight, (2, 3, 1, 0)).reshape(K, C_out)
    w = jnp.pad(w, ((0, 0), (0, C_out_p - C_out))).astype(compute_dtype)
    # Bias kept in f32 (epilogue math stays f32 even on the bf16 path).
    b = jnp.pad(bias.astype(jnp.float32), (0, C_out_p - C_out)).reshape(1, C_out_p)

    # ---- VMEM budget from (8,128)-tile-padded block sizes, x2 buffering ----
    e = np.dtype(compute_dtype).itemsize
    x_blk = Mb * _round_up(K, LANE) * e
    w_blk = _round_up(K, SUBLANE) * C_out_p * e      # grid-invariant, still 2x
    b_blk = SUBLANE * C_out_p * 4
    o_blk = Mb * C_out_p * 4
    need = 2 * (x_blk + w_blk + b_blk + o_blk) + (2 << 20)
    try:
        vmem_cap = pltpu.get_tpu_info().vmem_capacity_bytes
    except Exception:  # pragma: no cover - conservative fallback
        vmem_cap = 64 << 20
    vmem_limit = int(min(max(need, 4 << 20), vmem_cap // 2))

    flops = 2 * M_pad * K * C_out_p
    bytes_accessed = int(e * (patches.size + w.size) + 4 * (b.size + M_pad * C_out_p))

    out = pl.pallas_call(
        _gemm_bias_relu_kernel,
        out_shape=jax.ShapeDtypeStruct((M_pad, C_out_p), jnp.float32),
        grid_spec=pltpu.PrefetchScalarGridSpec(
            num_scalar_prefetch=0,
            grid=(M_pad // Mb,),
            in_specs=[
                pl.BlockSpec((Mb, K), lambda m: (m, 0)),
                pl.BlockSpec((K, C_out_p), lambda m: (0, 0)),
                pl.BlockSpec((1, C_out_p), lambda m: (0, 0)),
            ],
            out_specs=pl.BlockSpec((Mb, C_out_p), lambda m: (m, 0)),
        ),
        compiler_params=pltpu.CompilerParams(
            # Shards row blocks across the two TensorCores on v7x; on v5e/v6e
            # (single TC) the grid is just a pipelined serial loop.
            dimension_semantics=("parallel",),
            vmem_limit_bytes=vmem_limit),
        cost_estimate=pl.CostEstimate(flops=flops, transcendentals=0,
                                      bytes_accessed=bytes_accessed),
    )(patches, w, b)

    # Drop padded rows / channels, restore NCHW.
    out = out[:M, :C_out].reshape(N, H_out, W_out, C_out)
    return jnp.transpose(out, (0, 3, 1, 2))


# --------------------------------- main --------------------------------------
if __name__ == "__main__":
    # conv2DRelu(in_channels=4, n_filters=8, k_size=3, stride=1, padding=1)
    N, C_in, H, W = 2, 4, 16, 16
    C_out, KH, KW = 8, 3, 3
    stride, padding, dilation = 1, 1, 1

    key = jax.random.PRNGKey(0)
    kx, kw_, kb = jax.random.split(key, 3)

    x = jax.random.normal(kx, (N, C_in, H, W), dtype=jnp.float32)

    # Deterministic init mimicking PyTorch's default uniform(-b, b) ranges.
    fan_in = C_in * KH * KW
    bound = 1.0 / np.sqrt(fan_in)
    weight = jax.random.uniform(kw_, (C_out, C_in, KH, KW),
                                minval=-bound, maxval=bound, dtype=jnp.float32)
    bias = jax.random.uniform(kb, (C_out,),
                              minval=-bound, maxval=bound, dtype=jnp.float32)

    fwd = jax.jit(functools.partial(conv2d_relu, stride=stride,
                                    padding=padding, dilation=dilation))
    out = jax.block_until_ready(fwd(x, weight, bias))

    # Reference check against XLA's conv (NCHW, OIHW) + bias + ReLU.
    ref = jax.lax.conv_general_dilated(
        x, weight, window_strides=(stride, stride),
        padding=[(padding, padding), (padding, padding)],
        rhs_dilation=(dilation, dilation),
        dimension_numbers=("NCHW", "OIHW", "NCHW"))
    ref = jnp.maximum(ref + bias.reshape(1, C_out, 1, 1), 0.0)

    assert out.shape == (N, C_out, H, W), out.shape
    np.testing.assert_allclose(np.asarray(out), np.asarray(ref),
                               rtol=1e-5, atol=1e-5)
    print("KERNEL_OK")
</pallas_src>

<mosaic_0001>
module attributes {stable_mosaic.version = 11 : i64} {
  func.func @_gemm_bias_relu_kernel(%arg0: i32, %arg1: memref<256x36xf32, #tpu.memory_space<vmem>>, %arg2: memref<36x128xf32, #tpu.memory_space<vmem>>, %arg3: memref<1x128xf32, #tpu.memory_space<vmem>>, %arg4: memref<256x128xf32, #tpu.memory_space<vmem>>) attributes {dimension_semantics = [#tpu.dimension_semantics<parallel>], iteration_bounds = array<i64: 2>, scalar_prefetch = 0 : i64, scratch_operands = 0 : i64, tpu.core_type = #tpu.core_type<tc>, window_params = [{transform_indices = @transform_0, window_bounds = array<i64: 256, 36>}, {pipeline_mode = #tpu.pipeline_mode<synchronous>, transform_indices = @transform_1, window_bounds = array<i64: 36, 128>}, {pipeline_mode = #tpu.pipeline_mode<synchronous>, transform_indices = @transform_2, window_bounds = array<i64: 1, 128>}, {transform_indices = @transform_3, window_bounds = array<i64: 256, 128>}]} {
    %c0 = arith.constant 0 : index
    %c0_0 = arith.constant 0 : index
    %0 = vector.load %arg1[%c0, %c0_0] : memref<256x36xf32, #tpu.memory_space<vmem>>, vector<256x36xf32>
    %c0_1 = arith.constant 0 : index
    %c0_2 = arith.constant 0 : index
    %1 = vector.load %arg2[%c0_1, %c0_2] : memref<36x128xf32, #tpu.memory_space<vmem>>, vector<36x128xf32>
    %cst = arith.constant dense<0.000000e+00> : vector<256x128xf32>
    %2 = tpu.matmul %0, %1, %cst {dimension_numbers = #tpu.dot_dimension_numbers<[1], [0], [0], [1], [0, 0, 1, 1], [], []>} : vector<256x36xf32>, vector<36x128xf32>, vector<256x128xf32> -> vector<256x128xf32>
    %c0_3 = arith.constant 0 : index
    %c0_4 = arith.constant 0 : index
    %3 = vector.load %arg3[%c0_3, %c0_4] : memref<1x128xf32, #tpu.memory_space<vmem>>, vector<1x128xf32>
    %4 = vector.broadcast %3 : vector<1x128xf32> to vector<256x128xf32>
    %5 = arith.addf %2, %4 : vector<256x128xf32>
    %cst_5 = arith.constant 0.000000e+00 : f32
    %6 = vector.broadcast %cst_5 : f32 to vector<256x128xf32>
    %7 = arith.maximumf %5, %6 : vector<256x128xf32>
    %c0_6 = arith.constant 0 : index
    %c0_7 = arith.constant 0 : index
    %8 = vector.load %arg4[%c0_6, %c0_7] : memref<256x128xf32, #tpu.memory_space<vmem>>, vector<256x128xf32>
    tpu.vector_store %arg4[%c0_6, %c0_7], %7 {strides = array<i32>} : memref<256x128xf32, #tpu.memory_space<vmem>>, vector<256x128xf32>,
    return
  }
  func.func @transform_0(%arg0: i32) -> (i32, i32) {
    %c0_i32 = arith.constant 0 : i32
    %c0_i32_0 = arith.constant 0 : i32
    return %arg0, %c0_i32 : i32, i32
  }
  func.func @transform_1(%arg0: i32) -> (i32, i32) {
    %c0_i32 = arith.constant 0 : i32
    %c0_i32_0 = arith.constant 0 : i32
    %c0_i32_1 = arith.constant 0 : i32
    return %c0_i32, %c0_i32_0 : i32, i32
  }
  func.func @transform_2(%arg0: i32) -> (i32, i32) {
    %c0_i32 = arith.constant 0 : i32
    %c0_i32_0 = arith.constant 0 : i32
    %c0_i32_1 = arith.constant 0 : i32
    return %c0_i32, %c0_i32_0 : i32, i32
  }
  func.func @transform_3(%arg0: i32) -> (i32, i32) {
    %c0_i32 = arith.constant 0 : i32
    %c0_i32_0 = arith.constant 0 : i32
    return %arg0, %c0_i32 : i32, i32
  }
}

</mosaic_0001>

<bundles_post_ra>
// kernel: conv2d_relu.1
= control target key start
LH: loop header
LB: loop body
LE: loop exit
PB: predicated region body
PF: predicated region fallthrough
CT: control target
= control target key end

     0   :  { %s854_s12 = smov 0   ;;  %s1034_s0 = inlined_call_operand.vmem [shape: f32[512,36], index: 0, kind: input, shape index: {}]   ;;  %s1035_s1 = inlined_call_operand.vmem [shape: f32[36,128], index: 1, kind: input, shape index: {}]   ;;  %s1036_s2 = inlined_call_operand.vmem [shape: f32[1,128], index: 2, kind: input, shape index: {}]   ;;  %s1037_s3 = inlined_call_operand.vmem [shape: f32[512,128], index: 3, kind: output, shape index: {}]  }
   0x1 LB: > { %s664_s13 = sadd.s32 4294967295, %s832_s12   ;;  %p668_p0 = scmp.ge.s32.totalorder %s832_s12, 1  ;;  %s832_s12 = sphi %s854_s12, %s13_s12  }
   0x2   : > { %p138_p1 = scmp.lt.s32.totalorder %s832_s12, 3 }
   0x4   : > { %p139_p2 = pnand %p668_p0, %p138_p1 }
   0x5   : > { %v206_v0 = vld [vmem:[%s1035_s1] sm:$0xff] (!%p139_p2)  ;;  %v207_v1 = vld [vmem:[%s1035_s1 + $0x8] sm:$0xff] (!%p139_p2)  ;;  %v208_v2 = vld [vmem:[%s1035_s1 + $0x10] sm:$0xff] (!%p139_p2)  ;;  %s669_s20 = sshll.u32 (!%p139_p2), %s664_s13, 5  ;;  %vm315_vm0 = vcmask (!%p139_p2), 1043456   ;;  %vm218_vm1 = vcmask (!%p139_p2), 293888  }
   0x6   : > { %142 = sbr.rel (%p139_p2) target bundleno = 265 (0x109), region = 32  ;;  %v804_v3 = vpack.c.bf16 (!%p139_p2), %v207_v1, %v206_v0  ;;  %v209_v4 = vld [vmem:[%s1035_s1 + $0x18] sm:$0xff] (!%p139_p2)  ;;  %p163_p3 = scmp.lt.s32.totalorder (!%p139_p2), %s669_s20, 63  ;;  %v210_v6 = vld [vmem:[%s1035_s1 + $0x20] sm:$0xf] (!%p139_p2) }
   0x7   : > { %v808_v5 = vpack.c.bf16 (!%p139_p2), %v209_v4, %v208_v2  ;;  %v958_v39 = vld [vmem:[%s1036_s2] ss:$0 sm:$0xff] (!%p139_p2) }
   0x8   : > { %805 = vmatprep.subr.bf16.mxu0 (!%p139_p2), %v804_v3  ;;  %812 = vmatprep.subr.bf16.mxu1 (!%p139_p2), %v804_v3 }
   0x9   : > { %807 = vmatpush3.bf16.msra.mxu0 (!%p139_p2), %v804_v3  ;;  %815 = vmatpush3.bf16.msra.mxu1 (!%p139_p2), %v804_v3 }
   0xa   : > { %809 = vmatprep.subr.bf16.mxu0 (!%p139_p2), %v808_v5  ;;  %813 = vmatprep.subr.bf16.mxu1 (!%p139_p2), %v808_v5 }
   0xd   : > { %s1039_s20 = smov (!%p163_p3, %s669_s20), 63  ;;  %811 = vmatpush3.bf16.msra.mxu0 %v808_v5  ;;  %816 = vmatpush3.bf16.msra.mxu1 %v808_v5 }
   0xe   : > { %s670_s23 = sshll.u32 %s1039_s20, 3  ;;  %754 = vmatprep.subr.msk.mxu0 %vm315_vm0, %v210_v6  ;;  %814 = vmatprep.subr.msk.mxu1 %vm315_vm0, %v210_v6 }
   0xf   : > { %s885_s28 = scalar_lea.vmem %s1034_s0, %s670_s23  ;;  %s967_s6 = scalar_lea.vmem %s1037_s3, %s670_s23 }
  0x10   : > { %v174_v7 = vld [vmem:[%s885_s28] sm:$0xff]  ;;  %v175_v9 = vld [vmem:[%s885_s28 + $0x8] sm:$0xff]  ;;  %v176_v11 = vld [vmem:[%s885_s28 + $0x10] sm:$0xff] }
  0x11   : > { %v190_v8 = vld [vmem:[%s885_s28 + $0x80] sm:$0xff]  ;;  %756 = vmatprep.mubr.msk.f32.mxu0 %vm218_vm1, %v174_v7  ;;  %v191_v10 = vld [vmem:[%s885_s28 + $0x88] sm:$0xff]  ;;  %v192_v12 = vld [vmem:[%s885_s28 + $0x90] sm:$0xff]  ;;  %755 = vmatpush3.msk.msra.mxu0 %vm315_vm0, %v210_v6 }
  0x12   : > { %780 = vmatprep.mubr.msk.f32.mxu1 %vm218_vm1, %v190_v8  ;;  %817 = vmatpush3.msk.msra.mxu1 %vm315_vm0, %v210_v6  ;;  %v177_v13 = vld [vmem:[%s885_s28 + $0x18] sm:$0xff]  ;;  %v178_v15 = vld [vmem:[%s885_s28 + $0x20] sm:$0xff]  ;;  %v179_v17 = vld [vmem:[%s885_s28 + $0x28] sm:$0xff] }
  0x13   : > { %757 = vmatmul.mubr.msk.f32.vlgmr.msra.gmra.mrb[0].mxu0 %vm218_vm1, %v175_v9  ;;  %781 = vmatmul.mubr.msk.f32.vlgmr.msra.gmra.mrb[0].mxu1 %vm218_vm1, %v191_v10  ;;  %v193_v14 = vld [vmem:[%s885_s28 + $0x98] sm:$0xff]  ;;  %v194_v16 = vld [vmem:[%s885_s28 + $0xa0] sm:$0xff]  ;;  %v195_v18 = vld [vmem:[%s885_s28 + $0xa8] sm:$0xff] }
  0x14   : > { %759 = vmatprep.mubr.msk.f32.mxu0 %vm218_vm1, %v176_v11  ;;  %783 = vmatprep.mubr.msk.f32.mxu1 %vm218_vm1, %v192_v12  ;;  %v180_v19 = vld [vmem:[%s885_s28 + $0x30] sm:$0xff]  ;;  %v181_v21 = vld [vmem:[%s885_s28 + $0x38] sm:$0xff]  ;;  %v182_v23 = vld [vmem:[%s885_s28 + $0x40] sm:$0xff] }
  0x15   : > { %v196_v20 = vld [vmem:[%s885_s28 + $0xb0] sm:$0xff]  ;;  %v197_v22 = vld [vmem:[%s885_s28 + $0xb8] sm:$0xff]  ;;  %v198_v24 = vld [vmem:[%s885_s28 + $0xc0] sm:$0xff] }
  0x16   : > { %v183_v25 = vld [vmem:[%s885_s28 + $0x48] sm:$0xff]  ;;  %v184_v27 = vld [vmem:[%s885_s28 + $0x50] sm:$0xff]  ;;  %v185_v29 = vld [vmem:[%s885_s28 + $0x58] sm:$0xff] }
  0x17   : > { %760 = vmatmul.mubr.msk.f32.gmra.mrb[2].mxu0 %vm218_vm1, %v177_v13  ;;  %784 = vmatmul.mubr.msk.f32.gmra.mrb[2].mxu1 %vm218_vm1, %v193_v14  ;;  %v199_v26 = vld [vmem:[%s885_s28 + $0xc8] sm:$0xff]  ;;  %v200_v28 = vld [vmem:[%s885_s28 + $0xd0] sm:$0xff]  ;;  %v201_v30 = vld [vmem:[%s885_s28 + $0xd8] sm:$0xff] }
  0x18   : > { %762 = vmatprep.mubr.msk.f32.mxu0 %vm218_vm1, %v178_v15  ;;  %786 = vmatprep.mubr.msk.f32.mxu1 %vm218_vm1, %v194_v16  ;;  %v186_v31 = vld [vmem:[%s885_s28 + $0x60] sm:$0xff]  ;;  %v187_v33 = vld [vmem:[%s885_s28 + $0x68] sm:$0xff]  ;;  %v188_v35 = vld [vmem:[%s885_s28 + $0x70] sm:$0xff] }
  0x19   : > { %v202_v32 = vld [vmem:[%s885_s28 + $0xe0] sm:$0xff]  ;;  %v203_v34 = vld [vmem:[%s885_s28 + $0xe8] sm:$0xff]  ;;  %v204_v36 = vld [vmem:[%s885_s28 + $0xf0] sm:$0xff] }
  0x1a   : > { %v189_v37 = vld [vmem:[%s885_s28 + $0x78] sm:$0xff] }
  0x1b   : > { %763 = vmatmul.mubr.msk.f32.gmra.mrb[4].mxu0 %vm218_vm1, %v179_v17  ;;  %787 = vmatmul.mubr.msk.f32.gmra.mrb[4].mxu1 %vm218_vm1, %v195_v18  ;;  %v205_v38 = vld [vmem:[%s885_s28 + $0xf8] sm:$0xff] }
  0x1c   : > { %765 = vmatprep.mubr.msk.f32.mxu0 %vm218_vm1, %v180_v19  ;;  %789 = vmatprep.mubr.msk.f32.mxu1 %vm218_vm1, %v196_v20 }
  0x1f   : > { %766 = vmatmul.mubr.msk.f32.gmra.mrb[6].mxu0 %vm218_vm1, %v181_v21  ;;  %790 = vmatmul.mubr.msk.f32.gmra.mrb[6].mxu1 %vm218_vm1, %v197_v22 }
  0x20   : > { %768 = vmatprep.mubr.msk.f32.mxu0 %vm218_vm1, %v182_v23  ;;  %792 = vmatprep.mubr.msk.f32.mxu1 %vm218_vm1, %v198_v24 }
  0x23   : > { %769 = vmatmul.mubr.msk.f32.gmra.mrb[8].mxu0 %vm218_vm1, %v183_v25  ;;  %793 = vmatmul.mubr.msk.f32.gmra.mrb[8].mxu1 %vm218_vm1, %v199_v26 }
  0x24   : > { %771 = vmatprep.mubr.msk.f32.mxu0 %vm218_vm1, %v184_v27  ;;  %795 = vmatprep.mubr.msk.f32.mxu1 %vm218_vm1, %v200_v28 }
  0x27   : > { %772 = vmatmul.mubr.msk.f32.gmra.mrb[10].mxu0 %vm218_vm1, %v185_v29  ;;  %796 = vmatmul.mubr.msk.f32.gmra.mrb[10].mxu1 %vm218_vm1, %v201_v30 }
  0x28   : > { %774 = vmatprep.mubr.msk.f32.mxu0 %vm218_vm1, %v186_v31  ;;  %798 = vmatprep.mubr.msk.f32.mxu1 %vm218_vm1, %v202_v32 }
  0x2b   : > { %775 = vmatmul.mubr.msk.f32.gmra.mrb[12].mxu0 %vm218_vm1, %v187_v33  ;;  %799 = vmatmul.mubr.msk.f32.gmra.mrb[12].mxu1 %vm218_vm1, %v203_v34 }
  0x2c   : > { %777 = vmatprep.mubr.msk.f32.mxu0 %vm218_vm1, %v188_v35  ;;  %801 = vmatprep.mubr.msk.f32.mxu1 %vm218_vm1, %v204_v36 }
  0x2f   : > { %778 = vmatmul.mubr.msk.f32.gmra.mrb[14].mxu0 %vm218_vm1, %v189_v37  ;;  %802 = vmatmul.mubr.msk.f32.gmra.mrb[14].mxu1 %vm218_vm1, %v205_v38 }
  0xe6   : > { %v758_v40 = vpop.f32.mrb[0].mxu0  ;;  %v782_v41 = vpop.f32.mrb[0].mxu1 }
  0xe7   : > { %v391_v42 = vadd.f32 %v758_v40, %v958_v39  ;;  %v471_v43 = vadd.f32 %v782_v41, %v958_v39  ;;  %v385_v44 = vpop.f32.mrb[1].mxu0  ;;  %v465_v45 = vpop.f32.mrb[1].mxu1 }
  0xe8   : > { %v386_v46 = vadd.f32 %v958_v39, %v385_v44  ;;  %v466_v47 = vadd.f32 %v958_v39, %v465_v45 }
  0xe9   : > { %v545_v48 = vmax.f32 %v391_v42, 0.0  ;;  %v561_v49 = vmax.f32 %v471_v43, 0.0 }
  0xea   : > { %v544_v50 = vmax.f32 %v386_v46, 0.0  ;;  %v560_v51 = vmax.f32 %v466_v47, 0.0  ;;  %v761_v52 = vpop.f32.mrb[2].mxu0  ;;  %v785_v53 = vpop.f32.mrb[2].mxu1 }
  0xeb   : > { %577 = vst [vmem:[%s967_s6 + $0x8] sm:$0xff] %v545_v48  ;;  %593 = vst [vmem:[%s967_s6 + $0x88] sm:$0xff] %v561_v49  ;;  %v401_v54 = vadd.f32 %v761_v52, %v958_v39  ;;  %v481_v55 = vadd.f32 %v785_v53, %v958_v39  ;;  %v395_v56 = vpop.f32.mrb[3].mxu0  ;;  %v475_v57 = vpop.f32.mrb[3].mxu1 }
  0xec   : > { %576 = vst [vmem:[%s967_s6] sm:$0xff] %v544_v50  ;;  %592 = vst [vmem:[%s967_s6 + $0x80] sm:$0xff] %v560_v51  ;;  %v396_v58 = vadd.f32 %v958_v39, %v395_v56  ;;  %v476_v59 = vadd.f32 %v958_v39, %v475_v57 }
  0xed   : > { %v547_v60 = vmax.f32 %v401_v54, 0.0  ;;  %v563_v61 = vmax.f32 %v481_v55, 0.0 }
  0xee   : > { %v546_v62 = vmax.f32 %v396_v58, 0.0  ;;  %v562_v63 = vmax.f32 %v476_v59, 0.0  ;;  %v764_v0 = vpop.f32.mrb[4].mxu0  ;;  %v788_v1 = vpop.f32.mrb[4].mxu1 }
  0xef   : > { %579 = vst [vmem:[%s967_s6 + $0x18] sm:$0xff] %v547_v60  ;;  %595 = vst [vmem:[%s967_s6 + $0x98] sm:$0xff] %v563_v61  ;;  %v411_v2 = vadd.f32 %v764_v0, %v958_v39  ;;  %v491_v3 = vadd.f32 %v788_v1, %v958_v39  ;;  %v405_v4 = vpop.f32.mrb[5].mxu0  ;;  %v485_v5 = vpop.f32.mrb[5].mxu1 }
  0xf0   : > { %578 = vst [vmem:[%s967_s6 + $0x10] sm:$0xff] %v546_v62  ;;  %594 = vst [vmem:[%s967_s6 + $0x90] sm:$0xff] %v562_v63  ;;  %v406_v6 = vadd.f32 %v958_v39, %v405_v4  ;;  %v486_v7 = vadd.f32 %v958_v39, %v485_v5 }
  0xf1   : > { %v549_v8 = vmax.f32 %v411_v2, 0.0  ;;  %v565_v9 = vmax.f32 %v491_v3, 0.0 }
  0xf2   : > { %v548_v10 = vmax.f32 %v406_v6, 0.0  ;;  %v564_v11 = vmax.f32 %v486_v7, 0.0  ;;  %v767_v12 = vpop.f32.mrb[6].mxu0  ;;  %v791_v13 = vpop.f32.mrb[6].mxu1 }
  0xf3   : > { %581 = vst [vmem:[%s967_s6 + $0x28] sm:$0xff] %v549_v8  ;;  %597 = vst [vmem:[%s967_s6 + $0xa8] sm:$0xff] %v565_v9  ;;  %v421_v14 = vadd.f32 %v767_v12, %v958_v39  ;;  %v501_v15 = vadd.f32 %v791_v13, %v958_v39  ;;  %v415_v16 = vpop.f32.mrb[7].mxu0  ;;  %v495_v17 = vpop.f32.mrb[7].mxu1 }
  0xf4   : > { %580 = vst [vmem:[%s967_s6 + $0x20] sm:$0xff] %v548_v10  ;;  %596 = vst [vmem:[%s967_s6 + $0xa0] sm:$0xff] %v564_v11  ;;  %v416_v18 = vadd.f32 %v958_v39, %v415_v16  ;;  %v496_v19 = vadd.f32 %v958_v39, %v495_v17 }
  0xf5   : > { %v551_v20 = vmax.f32 %v421_v14, 0.0  ;;  %v567_v21 = vmax.f32 %v501_v15, 0.0 }
  0xf6   : > { %v550_v22 = vmax.f32 %v416_v18, 0.0  ;;  %v566_v23 = vmax.f32 %v496_v19, 0.0  ;;  %v770_v24 = vpop.f32.mrb[8].mxu0  ;;  %v794_v25 = vpop.f32.mrb[8].mxu1 }
  0xf7   : > { %583 = vst [vmem:[%s967_s6 + $0x38] sm:$0xff] %v551_v20  ;;  %599 = vst [vmem:[%s967_s6 + $0xb8] sm:$0xff] %v567_v21  ;;  %v431_v26 = vadd.f32 %v770_v24, %v958_v39  ;;  %v511_v27 = vadd.f32 %v794_v25, %v958_v39  ;;  %v425_v28 = vpop.f32.mrb[9].mxu0  ;;  %v505_v29 = vpop.f32.mrb[9].mxu1 }
  0xf8   : > { %582 = vst [vmem:[%s967_s6 + $0x30] sm:$0xff] %v550_v22  ;;  %598 = vst [vmem:[%s967_s6 + $0xb0] sm:$0xff] %v566_v23  ;;  %v426_v30 = vadd.f32 %v958_v39, %v425_v28  ;;  %v506_v31 = vadd.f32 %v958_v39, %v505_v29 }
  0xf9   : > { %v553_v32 = vmax.f32 %v431_v26, 0.0  ;;  %v569_v33 = vmax.f32 %v511_v27, 0.0 }
  0xfa   : > { %v552_v34 = vmax.f32 %v426_v30, 0.0  ;;  %v568_v35 = vmax.f32 %v506_v31, 0.0  ;;  %v773_v36 = vpop.f32.mrb[10].mxu0  ;;  %v797_v37 = vpop.f32.mrb[10].mxu1 }
  0xfb   : > { %585 = vst [vmem:[%s967_s6 + $0x48] sm:$0xff] %v553_v32  ;;  %601 = vst [vmem:[%s967_s6 + $0xc8] sm:$0xff] %v569_v33  ;;  %v441_v38 = vadd.f32 %v773_v36, %v958_v39  ;;  %v521_v40 = vadd.f32 %v797_v37, %v958_v39  ;;  %v435_v41 = vpop.f32.mrb[11].mxu0  ;;  %v515_v42 = vpop.f32.mrb[11].mxu1 }
  0xfc   : > { %584 = vst [vmem:[%s967_s6 + $0x40] sm:$0xff] %v552_v34  ;;  %600 = vst [vmem:[%s967_s6 + $0xc0] sm:$0xff] %v568_v35  ;;  %v436_v43 = vadd.f32 %v958_v39, %v435_v41  ;;  %v516_v44 = vadd.f32 %v958_v39, %v515_v42 }
  0xfd   : > { %v555_v45 = vmax.f32 %v441_v38, 0.0  ;;  %v571_v46 = vmax.f32 %v521_v40, 0.0 }
  0xfe   : > { %v554_v47 = vmax.f32 %v436_v43, 0.0  ;;  %v570_v48 = vmax.f32 %v516_v44, 0.0  ;;  %v776_v49 = vpop.f32.mrb[12].mxu0  ;;  %v800_v50 = vpop.f32.mrb[12].mxu1 }
  0xff   : > { %587 = vst [vmem:[%s967_s6 + $0x58] sm:$0xff] %v555_v45  ;;  %603 = vst [vmem:[%s967_s6 + $0xd8] sm:$0xff] %v571_v46  ;;  %v451_v51 = vadd.f32 %v776_v49, %v958_v39  ;;  %v531_v52 = vadd.f32 %v800_v50, %v958_v39  ;;  %v445_v53 = vpop.f32.mrb[13].mxu0  ;;  %v525_v54 = vpop.f32.mrb[13].mxu1 }
 0x100   : > { %586 = vst [vmem:[%s967_s6 + $0x50] sm:$0xff] %v554_v47  ;;  %602 = vst [vmem:[%s967_s6 + $0xd0] sm:$0xff] %v570_v48  ;;  %v446_v55 = vadd.f32 %v958_v39, %v445_v53  ;;  %v526_v56 = vadd.f32 %v958_v39, %v525_v54 }
 0x101   : > { %v557_v57 = vmax.f32 %v451_v51, 0.0  ;;  %v573_v58 = vmax.f32 %v531_v52, 0.0 }
 0x102   : > { %v556_v59 = vmax.f32 %v446_v55, 0.0  ;;  %v572_v60 = vmax.f32 %v526_v56, 0.0  ;;  %v779_v61 = vpop.f32.mrb[14].mxu0  ;;  %v803_v62 = vpop.f32.mrb[14].mxu1 }
 0x103   : > { %589 = vst [vmem:[%s967_s6 + $0x68] sm:$0xff] %v557_v57  ;;  %605 = vst [vmem:[%s967_s6 + $0xe8] sm:$0xff] %v573_v58  ;;  %v461_v63 = vadd.f32 %v779_v61, %v958_v39  ;;  %v541_v0 = vadd.f32 %v803_v62, %v958_v39  ;;  %v455_v1 = vpop.f32.mrb[15].mxu0  ;;  %v535_v2 = vpop.f32.mrb[15].mxu1 }
 0x104   : > { %588 = vst [vmem:[%s967_s6 + $0x60] sm:$0xff] %v556_v59  ;;  %604 = vst [vmem:[%s967_s6 + $0xe0] sm:$0xff] %v572_v60  ;;  %v456_v3 = vadd.f32 %v958_v39, %v455_v1  ;;  %v536_v4 = vadd.f32 %v958_v39, %v535_v2 }
 0x105   : > { %v559_v5 = vmax.f32 %v461_v63, 0.0  ;;  %v575_v6 = vmax.f32 %v541_v0, 0.0 }
 0x106   : > { %v558_v7 = vmax.f32 %v456_v3, 0.0  ;;  %v574_v8 = vmax.f32 %v536_v4, 0.0 }
 0x107   : > { %591 = vst [vmem:[%s967_s6 + $0x78] sm:$0xff] %v559_v5  ;;  %607 = vst [vmem:[%s967_s6 + $0xf8] sm:$0xff] %v575_v6 }
 0x108   : > { %590 = vst [vmem:[%s967_s6 + $0x70] sm:$0xff] %v558_v7  ;;  %606 = vst [vmem:[%s967_s6 + $0xf0] sm:$0xff] %v574_v8 }
 0x109 PF: > { %s13_s12 = sadd.s32 1, %s832_s12  }
 0x10a   : > { %p10_p4 = scmp.ge.s32.totalorder %s13_s12, 4  }
 0x10c   :  { %12 = sbr.rel (!%p10_p4) target bundleno = 1 (0x1), region = 62 }

</bundles_post_ra>
